<compile_context>
chip_gen: v7x
topology: tpu7x:2x2x1
jax: 0.10.0
libtpu: 0.0.40
codegen_flags: <defaults>
</compile_context>

<pallas_src>
import math

import jax
import jax.numpy as jnp
import numpy as np
from jax import lax
from jax.experimental import pallas as pl
from jax.experimental.pallas import tpu as pltpu


def _pair(v):
    return (v, v) if isinstance(v, int) else tuple(v)


def _conv_out_size(n, k, s, p, d):
    return (n + 2 * p - d * (k - 1) - 1) // s + 1


def _vmem_params():
    """Generation-aware (working-set budget, vmem_limit_bytes)."""
    cap = None
    try:
        cap = getattr(pltpu.get_tpu_info(), "vmem_capacity_bytes", None)
    except Exception:
        cap = None
    if cap is None:
        cap = 64 * 1024 * 1024                      # conservative (v7x-sized) default
    if cap >= 100 * 1024 * 1024:                    # v5e / v6e: 128 MiB VMEM
        return 48 * 1024 * 1024, 100 * 1024 * 1024
    return 24 * 1024 * 1024, 48 * 1024 * 1024       # v7x: 64 MiB per TensorCore


def _pick_tile(hw, bytes_per_lane, fixed_bytes=0, batch=1, max_tile=4096):
    """Largest lane-dense tile of the (128-padded) flattened spatial axis that
    divides hw and fits the VMEM budget.  Prefers 256-multiples (v6e/v7x MXU N
    dim) and guarantees >=2 parallel grid steps so both v7x cores get work."""
    budget, _ = _vmem_params()
    avail = max(budget - fixed_bytes, 2 << 20)
    cap = max(128, min(max_tile, hw, int(avail // max(bytes_per_lane, 1))))
    cap = cap // 128 * 128
    divs = [t for t in range(128, hw + 1, 128) if hw % t == 0 and t <= cap]
    if not divs:
        return min(hw, 128)
    tile = max(divs)
    divs256 = [t for t in divs if t % 256 == 0]
    if divs256 and 2 * max(divs256) >= tile:
        tile = max(divs256)
    while batch * (hw // tile) < 2:
        smaller = [t for t in divs if t < tile]
        if not smaller:
            break
        tile = max(smaller)
    return tile


def _pad_lanes(a, n):
    pad = n - a.shape[-1]
    if pad == 0:
        return a
    cfg = [(0, 0)] * (a.ndim - 1) + [(0, pad)]
    return jnp.pad(a, cfg)


# ----------------------------------------------------------------------------
# Plain Conv2d (conv_offset_mask): im2col + tiled Pallas bias matmul (bf16).
# ----------------------------------------------------------------------------
def _bias_matmul_kernel(cols_ref, w_ref, b_ref, o_ref):
    acc = jnp.dot(w_ref[...], cols_ref[0], preferred_element_type=jnp.float32)
    o_ref[0] = (acc + b_ref[...]).astype(o_ref.dtype)


def _im2col(x, kh, kw, stride, padding, dilation):
    # TODO(synk): im2col materializes K*C_in*HWo in HBM; a resident-x in-kernel
    # shifted-slice accumulation would cut that DMA ~K*x (left as-is here).
    B, C, H, W = x.shape
    sh, sw = stride
    ph, pw = padding
    dh, dw = dilation
    H_out = _conv_out_size(H, kh, sh, ph, dh)
    W_out = _conv_out_size(W, kw, sw, pw, dw)
    xp = jnp.pad(x, ((0, 0), (0, 0), (ph, ph), (pw, pw)))
    pieces = []
    for ki in range(kh):
        for kj in range(kw):
            piece = lax.slice(
                xp,
                (0, 0, ki * dh, kj * dw),
                (B, C, ki * dh + (H_out - 1) * sh + 1,
                 kj * dw + (W_out - 1) * sw + 1),
                (1, 1, sh, sw))
            pieces.append(piece.reshape(B, C, H_out * W_out))
    # rows ordered tap-major, channel-minor -> matches weight layout below
    return jnp.concatenate(pieces, axis=1), H_out, W_out


def _conv2d(x, weight, bias, stride, padding, dilation=(1, 1)):
    B = x.shape[0]
    C_out, C_in, kh, kw = weight.shape
    cols, H_out, W_out = _im2col(x, kh, kw, stride, padding, dilation)
    KC = kh * kw * C_in
    HWo = H_out * W_out
    HWp = -(-HWo // 128) * 128
    cols = _pad_lanes(cols, HWp).astype(jnp.bfloat16)   # bf16 halves im2col DMA
    _, limit = _vmem_params()

    bytes_per_lane = 2 * (2 * KC) + 2 * (4 * C_out) + 64
    fixed = 4 * C_out * KC + 4 * C_out + 4096
    tile = _pick_tile(HWp, bytes_per_lane, fixed_bytes=fixed, batch=B)

    w2 = jnp.transpose(weight, (0, 2, 3, 1)).reshape(C_out, KC).astype(jnp.bfloat16)
    b2 = bias.reshape(C_out, 1)

    out = pl.pallas_call(
        _bias_matmul_kernel,
        out_shape=jax.ShapeDtypeStruct((B, C_out, HWp), x.dtype),
        grid=(B, HWp // tile),
        in_specs=[
            pl.BlockSpec((1, KC, tile), lambda b, t: (b, 0, t)),
            pl.BlockSpec((C_out, KC), lambda b, t: (0, 0)),
            pl.BlockSpec((C_out, 1), lambda b, t: (0, 0)),
        ],
        out_specs=pl.BlockSpec((1, C_out, tile), lambda b, t: (b, 0, t)),
        compiler_params=pltpu.CompilerParams(
            dimension_semantics=("parallel", "parallel"),
            vmem_limit_bytes=limit),
    )(cols, w2, b2)
    return out[:, :, :HWo].reshape(B, C_out, H_out, W_out)


# ----------------------------------------------------------------------------
# Modulated deformable Conv2d.
# ----------------------------------------------------------------------------
def _make_deform_kernel(C_in, C_out, H, W, K):
    def kernel(x_ref, offy_ref, offx_ref, mlog_ref, w_ref, b_ref, o_ref, col_ref):
        x_flat = x_ref[0]                                   # [C_in*H, W] bf16
        offy = offy_ref[0]                                  # [K, T] (base+tap folded)
        offx = offx_ref[0]                                  # [K, T]
        msk = jax.nn.sigmoid(mlog_ref[0])                   # [K, T]
        T = offy.shape[1]
        rows = lax.broadcasted_iota(jnp.int32, (H, 1), 0).astype(jnp.float32)
        cols = lax.broadcasted_iota(jnp.int32, (W, 1), 0).astype(jnp.float32)

        # Static unroll over the K taps: separable bilinear sampling.  Out-of-
        # bounds coordinates get zero hat weight == zero padding (DCNv2 semantics).
        for k in range(K):
            wy = jnp.maximum(0.0, 1.0 - jnp.abs(offy[k:k + 1, :] - rows))   # [H, T]
            wx = jnp.maximum(0.0, 1.0 - jnp.abs(offx[k:k + 1, :] - cols))   # [W, T]
            # stage 1 (MXU): sample along W for all C_in*H rows at once
            tmp = jnp.dot(x_flat, wx.astype(jnp.bfloat16),
                          preferred_element_type=jnp.float32)               # [C_in*H, T]
            # stage 2 (VPU mul + sublane reduce over H)
            samp = jnp.sum(tmp.reshape(C_in, H, T) * wy[None, :, :], axis=1)  # [C_in, T]
            col_ref[k * C_in:(k + 1) * C_in, :] = (
                samp * msk[k:k + 1, :]).astype(jnp.bfloat16)

        # One fused matmul over the full K*C_in contraction: bf16 in, f32 acc.
        acc = jnp.dot(w_ref[...], col_ref[...], preferred_element_type=jnp.float32)
        o_ref[0] = (acc + b_ref[...]).astype(o_ref.dtype)

    return kernel


def _deform_conv2d(x, weight, bias, offset, mask_logits, stride, padding, dilation):
    B, C_in, H, W = x.shape
    C_out, _, kh, kw = weight.shape
    K = kh * kw
    sh, sw = stride
    ph, pw = padding
    dh, dw = dilation
    H_out = _conv_out_size(H, kh, sh, ph, dh)
    W_out = _conv_out_size(W, kw, sw, pw, dw)
    HWo = H_out * W_out
    HWp = -(-HWo // 128) * 128
    _, limit = _vmem_params()

    # x as [C_in*H, W] bf16: stage-1 sampling matmul uses C_in*H MXU rows.
    x2 = x.reshape(B, C_in * H, W).astype(jnp.bfloat16)

    # DCNv2 channel convention: offset channel 2k = dy, 2k+1 = dx for tap k.
    off = offset.reshape(B, 2 * K, HWo)
    mlog = mask_logits.reshape(B, K, HWo)

    # Fold base output coords (stride/padding) and static tap displacement
    # into the offsets -> no coords input and no per-tap adds in-kernel.
    po = jnp.arange(HWo, dtype=jnp.int32)
    base_y = (po // W_out).astype(jnp.float32) * float(sh) - float(ph)
    base_x = (po % W_out).astype(jnp.float32) * float(sw) - float(pw)
    tap_y = jnp.array([(k // kw) * dh for k in range(K)], jnp.float32).reshape(1, K, 1)
    tap_x = jnp.array([(k % kw) * dw for k in range(K)], jnp.float32).reshape(1, K, 1)
    off_y = _pad_lanes(off[:, 0::2, :] + base_y.reshape(1, 1, HWo) + tap_y, HWp)
    off_x = _pad_lanes(off[:, 1::2, :] + base_x.reshape(1, 1, HWo) + tap_x, HWp)
    mlog = _pad_lanes(mlog, HWp)

    # Per-lane working set (f32 tmp + its reshaped view, wy/wx, bf16 col scratch,
    # offset/mask blocks double-buffered, output block) + fixed x/weight slabs.
    bytes_per_lane = (8 * C_in * H + 6 * (H + W) + 2 * K * C_in
                      + 24 * K + 8 * C_out + 4 * K + 64)
    fixed = 4 * C_in * H * W + 4 * C_out * K * C_in + 4096
    tile = _pick_tile(HWp, bytes_per_lane, fixed_bytes=fixed, batch=B)

    # Lane-dense bf16 weights for the fused K*C_in-contraction matmul.
    w2 = jnp.transpose(weight, (0, 2, 3, 1)).reshape(C_out, K * C_in)
    w2 = w2.astype(jnp.bfloat16)
    b2 = bias.reshape(C_out, 1)

    kernel = _make_deform_kernel(C_in, C_out, H, W, K)

    out = pl.pallas_call(
        kernel,
        out_shape=jax.ShapeDtypeStruct((B, C_out, HWp), x.dtype),
        grid=(B, HWp // tile),
        in_specs=[
            pl.BlockSpec((1, C_in * H, W), lambda b, t: (b, 0, 0)),
            pl.BlockSpec((1, K, tile), lambda b, t: (b, 0, t)),
            pl.BlockSpec((1, K, tile), lambda b, t: (b, 0, t)),
            pl.BlockSpec((1, K, tile), lambda b, t: (b, 0, t)),
            pl.BlockSpec((C_out, K * C_in), lambda b, t: (0, 0)),
            pl.BlockSpec((C_out, 1), lambda b, t: (0, 0)),
        ],
        out_specs=pl.BlockSpec((1, C_out, tile), lambda b, t: (b, 0, t)),
        scratch_shapes=[pltpu.VMEM((K * C_in, tile), jnp.bfloat16)],
        compiler_params=pltpu.CompilerParams(
            dimension_semantics=("parallel", "parallel"),
            vmem_limit_bytes=limit),
    )(x2, off_y, off_x, mlog, w2, b2)
    return out[:, :, :HWo].reshape(B, C_out, H_out, W_out)


# ----------------------------------------------------------------------------
# Module wrapper.
# ----------------------------------------------------------------------------
class ModulatedDeformConvPackPallas:
    """JAX/Pallas re-implementation of ModulatedDeformConvPack.forward (NCHW)."""

    def __init__(self, in_channels, out_channels, kernel_size, stride, padding,
                 dilation=1, groups=1, deformable_groups=1, bias=True,
                 lr_mult=0.1, key=None):
        # TODO(synk): groups > 1 / deformable_groups > 1 not implemented (module defaults are 1).
        assert groups == 1 and deformable_groups == 1
        self.in_channels = in_channels
        self.out_channels = out_channels
        self.kernel_size = _pair(kernel_size)
        self.stride = _pair(stride)
        self.padding = _pair(padding)
        self.dilation = _pair(dilation)
        self.deformable_groups = deformable_groups
        kh, kw = self.kernel_size
        K = kh * kw
        off_out = deformable_groups * 3 * K

        # conv_offset_mask: zero-initialized (init_offset()).
        self.off_w = jnp.zeros((off_out, in_channels, kh, kw), jnp.float32)
        self.off_b = jnp.zeros((off_out,), jnp.float32)

        # dcn weights: deterministic kaiming-uniform-like init.
        if key is None:
            key = jax.random.PRNGKey(0)
        k_w, k_b = jax.random.split(key)
        fan_in = in_channels * K
        bound = 1.0 / math.sqrt(fan_in)
        self.w = jax.random.uniform(k_w, (out_channels, in_channels, kh, kw),
                                    jnp.float32, -bound, bound)
        if bias:
            self.b = jax.random.uniform(k_b, (out_channels,), jnp.float32, -bound, bound)
        else:
            self.b = jnp.zeros((out_channels,), jnp.float32)

    def __call__(self, input_offset, input_real):
        kh, kw = self.kernel_size
        K = kh * kw
        dgK = self.deformable_groups * K

        # conv_offset_mask: plain Conv2d via im2col + Pallas matmul kernel.
        out_om = _conv2d(input_offset, self.off_w, self.off_b,
                         self.stride, self.padding, (1, 1))
        o1 = out_om[:, :dgK]
        o2 = out_om[:, dgK:2 * dgK]
        mask_logits = out_om[:, 2 * dgK:]
        offset = jnp.concatenate([o1, o2], axis=1)

        # modulated deformable conv (sigmoid on the mask applied in-kernel).
        out = _deform_conv2d(input_real, self.w, self.b, offset, mask_logits,
                             self.stride, self.padding, self.dilation)
        return out, offset


if __name__ == "__main__":
    B, C_in, H, W = 2, 4, 16, 16
    C_out = 8

    key = jax.random.PRNGKey(0)
    k1, k2, k3 = jax.random.split(key, 3)
    input_offset = jax.random.normal(k1, (B, C_in, H, W), jnp.float32)
    input_real = jax.random.normal(k2, (B, C_in, H, W), jnp.float32)

    mod = ModulatedDeformConvPackPallas(
        in_channels=C_in, out_channels=C_out, kernel_size=(3, 3),
        stride=1, padding=1, dilation=1, groups=1, deformable_groups=1,
        bias=True, key=k3)

    out, offset = mod(input_offset, input_real)
    out = jax.block_until_ready(out)
    offset = jax.block_until_ready(offset)

    assert out.shape == (B, C_out, H, W)
    assert offset.shape == (B, 2 * 9, H, W)

    # conv_offset_mask is zero-initialized, so offsets are 0 and the mask is
    # sigmoid(0)=0.5 everywhere -> the deformable conv reduces to
    # 0.5 * conv2d(input_real, w) + b.
    np.testing.assert_allclose(np.asarray(offset), 0.0, atol=1e-6)

    # bf16-matched reference (kernel matmuls use bf16 inputs, f32 accumulation).
    ref_bf = lax.conv_general_dilated(
        input_real.astype(jnp.bfloat16), mod.w.astype(jnp.bfloat16),
        window_strides=(1, 1), padding=((1, 1), (1, 1)),
        dimension_numbers=("NCHW", "OIHW", "NCHW"),
        preferred_element_type=jnp.float32)
    ref_bf = 0.5 * ref_bf + mod.b.reshape(1, C_out, 1, 1)
    np.testing.assert_allclose(np.asarray(out), np.asarray(ref_bf),
                               rtol=1e-4, atol=1e-4)

    # Full-f32 reference with a loose tolerance bounding the bf16 rounding error.
    ref_f32 = lax.conv_general_dilated(
        input_real, mod.w, window_strides=(1, 1), padding=((1, 1), (1, 1)),
        dimension_numbers=("NCHW", "OIHW", "NCHW"))
    ref_f32 = 0.5 * ref_f32 + mod.b.reshape(1, C_out, 1, 1)
    np.testing.assert_allclose(np.asarray(out), np.asarray(ref_f32),
                               rtol=2e-2, atol=2e-2)

    print("KERNEL_OK")
</pallas_src>

<mosaic_0001>
module attributes {stable_mosaic.version = 11 : i64} {
  func.func @_bias_matmul_kernel(%arg0: i32, %arg1: i32, %arg2: memref<1x36x256xbf16, #tpu.memory_space<vmem>>, %arg3: memref<27x36xbf16, #tpu.memory_space<vmem>>, %arg4: memref<27x1xf32, #tpu.memory_space<vmem>>, %arg5: memref<1x27x256xf32, #tpu.memory_space<vmem>>) attributes {dimension_semantics = [#tpu.dimension_semantics<parallel>, #tpu.dimension_semantics<parallel>], iteration_bounds = array<i64: 2, 1>, scalar_prefetch = 0 : i64, scratch_operands = 0 : i64, tpu.core_type = #tpu.core_type<tc>, window_params = [{transform_indices = @transform_0, window_bounds = array<i64: 1, 36, 256>}, {pipeline_mode = #tpu.pipeline_mode<synchronous>, transform_indices = @transform_1, window_bounds = array<i64: 27, 36>}, {pipeline_mode = #tpu.pipeline_mode<synchronous>, transform_indices = @transform_2, window_bounds = array<i64: 27, 1>}, {transform_indices = @transform_3, window_bounds = array<i64: 1, 27, 256>}]} {
    %c0 = arith.constant 0 : index
    %c0_0 = arith.constant 0 : index
    %0 = vector.load %arg3[%c0, %c0_0] : memref<27x36xbf16, #tpu.memory_space<vmem>>, vector<27x36xbf16>
    %c0_1 = arith.constant 0 : index
    %c0_2 = arith.constant 0 : index
    %c0_3 = arith.constant 0 : index
    %1 = vector.load %arg2[%c0_1, %c0_2, %c0_3] : memref<1x36x256xbf16, #tpu.memory_space<vmem>>, vector<1x36x256xbf16>
    %2 = vector.shape_cast %1 : vector<1x36x256xbf16> to vector<36x256xbf16>
    %cst = arith.constant dense<0.000000e+00> : vector<27x256xf32>
    %3 = tpu.matmul %0, %2, %cst {dimension_numbers = #tpu.dot_dimension_numbers<[1], [0], [0], [1], [0, 0, 1, 1], [], []>} : vector<27x36xbf16>, vector<36x256xbf16>, vector<27x256xf32> -> vector<27x256xf32>
    %c0_4 = arith.constant 0 : index
    %c0_5 = arith.constant 0 : index
    %4 = vector.load %arg4[%c0_4, %c0_5] : memref<27x1xf32, #tpu.memory_space<vmem>>, vector<27x1xf32>
    %5 = vector.broadcast %4 : vector<27x1xf32> to vector<27x256xf32>
    %6 = arith.addf %3, %5 : vector<27x256xf32>
    %c0_6 = arith.constant 0 : index
    %c0_7 = arith.constant 0 : index
    %c0_8 = arith.constant 0 : index
    %7 = vector.load %arg5[%c0_6, %c0_7, %c0_8] : memref<1x27x256xf32, #tpu.memory_space<vmem>>, vector<1x27x256xf32>
    %8 = vector.shape_cast %7 : vector<1x27x256xf32> to vector<27x256xf32>
    %9 = vector.shape_cast %6 : vector<27x256xf32> to vector<1x27x256xf32>
    tpu.vector_store %arg5[%c0_6, %c0_7, %c0_8], %9 {strides = array<i32>} : memref<1x27x256xf32, #tpu.memory_space<vmem>>, vector<1x27x256xf32>,
    return
  }
  func.func @transform_0(%arg0: i32, %arg1: i32) -> (i32, i32, i32) {
    %c0_i32 = arith.constant 0 : i32
    %c0_i32_0 = arith.constant 0 : i32
    return %arg0, %c0_i32, %arg1 : i32, i32, i32
  }
  func.func @transform_1(%arg0: i32, %arg1: i32) -> (i32, i32) {
    %c0_i32 = arith.constant 0 : i32
    %c0_i32_0 = arith.constant 0 : i32
    %c0_i32_1 = arith.constant 0 : i32
    return %c0_i32, %c0_i32_0 : i32, i32
  }
  func.func @transform_2(%arg0: i32, %arg1: i32) -> (i32, i32) {
    %c0_i32 = arith.constant 0 : i32
    %c0_i32_0 = arith.constant 0 : i32
    %c0_i32_1 = arith.constant 0 : i32
    return %c0_i32, %c0_i32_0 : i32, i32
  }
  func.func @transform_3(%arg0: i32, %arg1: i32) -> (i32, i32, i32) {
    %c0_i32 = arith.constant 0 : i32
    %c0_i32_0 = arith.constant 0 : i32
    return %arg0, %c0_i32, %arg1 : i32, i32, i32
  }
}

</mosaic_0001>

<bundles_post_ra>
// kernel: tpu_custom_call.1
= control target key start
LH: loop header
LB: loop body
LE: loop exit
PB: predicated region body
PF: predicated region fallthrough
CT: control target
= control target key end

     0   :  { %s552_s12 = smov 0   ;;  %s554_s13 = smov 0   ;;  %s607_s0 = inlined_call_operand.vmem [shape: bf16[2,36,256], index: 0, kind: input, shape index: {}]   ;;  %s608_s1 = inlined_call_operand.vmem [shape: bf16[27,36], index: 1, kind: input, shape index: {}]   ;;  %s609_s2 = inlined_call_operand.vmem [shape: f32[27,1], index: 2, kind: input, shape index: {}]   ;;  %s610_s3 = inlined_call_operand.vmem [shape: f32[2,27,256], index: 3, kind: output, shape index: {}]  }
   0x1   :  { %s556_s14 = smov 0  }
   0x2 LB: > { %s25_s15 = sadd.s32 1, %s525_s13  ;;  %p445_p0 = scmp.ge.s32.totalorder %s529_s14, 1  ;;  %s529_s14 = sphi %s556_s14, %s13_s14   ;;  %s525_s13 = sphi %s554_s13, %s612_s13   ;;  %s521_s12 = sphi %s552_s12, %s611_s12  }
   0x3   : > { %p27_p1 = scmp.ge.s32.totalorder %s25_s15, 2  ;;  %p158_p2 = scmp.lt.s32.totalorder %s529_s14, 3 }
   0x5   : > { %s614_s15 = smov (%p27_p1, %s25_s15), 0  ;;  %p159_p3 = pnand %p445_p0, %p158_p2 }
   0x6   : > { %p191_p4 = scmp.lt.s32.totalorder (!%p159_p3), %s521_s12, 1  ;;  %v531_v0 = vmov (!%p159_p3), 0   ;;  %v222_v1 = vld [vmem:[%s609_s2 + $0x10] sm:$0xff] (!%p159_p3)  ;;  %v220_v2 = vld [vmem:[%s609_s2] sm:$0xff] (!%p159_p3)  ;;  %v223_v3 = vld [vmem:[%s609_s2 + $0x18] sm:$0x7] (!%p159_p3) }
   0x7   : > { %162 = sbr.rel (%p159_p3) target bundleno = 249 (0xf9), region = 32  ;;  %325 = vmatprep.mubr.bf16.mxu0 (!%p159_p3), %v531_v0  ;;  %335 = vmatprep.mubr.bf16.mxu1 (!%p159_p3), %v531_v0  ;;  %v221_v4 = vld [vmem:[%s609_s2 + $0x8] sm:$0xff] (!%p159_p3)  ;;  %vm286_vm0 = vcmask (!%p159_p3), 1041408   ;;  %v505_v13 = vld [vmem:[%s608_s1] sm:$0xff] (!%p159_p3)   ;;  %vm279_vm1 = vcmask (!%p159_p3), 293888  }
   0x8   : > { %496 = vset.pattern.permute.xlu1 (!%p159_p3), %v531_v0  ;;  %495 = vset.pattern.permute.xlu0 (!%p159_p3), %v531_v0  ;;  %v506_v14 = vld [vmem:[%s608_s1 + $0x8] sm:$0x3f] (!%p159_p3)  }
   0x9   : > { %236 = vperm.xlu1 (!%p159_p3), %496, %v222_v1   ;;  %226 = vperm.xlu0 (!%p159_p3), %495, %v220_v2  }
   0xd   : > { %241 = vperm.xlu1 (!%p159_p3), %496, %v223_v3   ;;  %231 = vperm.xlu0 (!%p159_p3), %495, %v221_v4  }
   0xe   : > { %s616_s12 = smov (!%p191_p4, %s521_s12), 1 }
   0xf   : > { %s469_s20 = smul.u32 40, %s616_s12  ;;  %s462_s5 = sshll.u32 %s616_s12, 6 }
  0x10   : > { %s208_s8 = scalar_lea.vmem %s610_s3, %s462_s5 }
  0x11   : > { %s198_s27 = scalar_lea.vmem %s607_s0, %s469_s20 }
  0x12   : > { %v497_v5 = vld [vmem:[%s198_s27 + $0x4] ss:$8 sps:$4 sm:$0xff]   ;;  %v499_v6 = vld [vmem:[%s198_s27] ss:$8 sps:$4 sm:$0xff]   ;;  %v500_v7 = vld [vmem:[%s198_s27 + $0x14] ss:$8 sps:$4 sm:$0xff]  }
  0x13   : > { %293 = vmatprep.subr.bf16.mxu0 %v497_v5  ;;  %463 = vmatprep.subr.bf16.mxu1 %v497_v5  ;;  %v219_v8 = vld [vmem:[%s198_s27 + $0x20] sm:$0x33]  ;;  %v502_v9 = vld [vmem:[%s198_s27 + $0x10] ss:$8 sps:$4 sm:$0xff]  }
  0x14   : > { %294 = vmatpush1.bf16.msra.mxu0 %v499_v6  ;;  %466 = vmatpush1.bf16.msra.mxu1 %v499_v6  ;;  %v456_v10 = vcombine.high %v219_v8, %v219_v8  ;;  %v455_v11 = vcombine.low %v219_v8, %v219_v8 }
  0x15   : > { %295 = vmatprep.subr.bf16.mxu0 %v500_v7  ;;  %464 = vmatprep.subr.bf16.mxu1 %v500_v7 }
  0x16   : > { %v288_v12 = vsel %vm286_vm0, %v455_v11, 0 }
  0x18   : > { %296 = vmatpush1.bf16.msra.mxu0 %v502_v9  ;;  %467 = vmatpush1.bf16.msra.mxu1 %v502_v9 }
  0x19   : > { %457 = vmatprep.subr.msk.bf16.mxu0 %vm286_vm0, %v456_v10  ;;  %465 = vmatprep.subr.msk.bf16.mxu1 %vm286_vm0, %v456_v10 }
  0x1c   : > { %298 = vmatpush1.bf16.msra.mxu0 %v288_v12  ;;  %468 = vmatpush1.bf16.msra.mxu1 %v288_v12 }
  0x1f   : > { %458 = vmatmul.mubr.msk.bf16.vlgmr.msra.gmra.mrb[0].mxu0 %vm279_vm1, %v505_v13  ;;  %459 = vmatmul.mubr.msk.bf16.vlgmr.msra.gmra.mrb[0].mxu1 %vm279_vm1, %v506_v14 }
  0x88   : > { %v237_v15 = vpop.permute.xlu1 %236  ;;  %v227_v16 = vpop.permute.xlu0 %226 }
  0x8c   : > { %v242_v17 = vpop.permute.xlu1 %241  ;;  %v232_v18 = vpop.permute.xlu0 %231 }
  0xf2   : > { %v327_v19 = vpop.f32.mrb[0].mxu0  ;;  %v337_v20 = vpop.f32.mrb[0].mxu1 }
  0xf3   : > { %v328_v21 = vadd.f32 %v327_v19, %v227_v16  ;;  %v338_v22 = vadd.f32 %v337_v20, %v237_v15  ;;  %v329_v23 = vpop.f32.mrb[1].mxu0  ;;  %v339_v24 = vpop.f32.mrb[1].mxu1 }
  0xf4   : > { %v330_v25 = vadd.f32 %v329_v23, %v227_v16  ;;  %v340_v26 = vadd.f32 %v339_v24, %v237_v15  ;;  %v331_v27 = vpop.f32.mrb[2].mxu0  ;;  %v341_v28 = vpop.f32.mrb[2].mxu1 }
  0xf5   : > { %346 = vst [vmem:[%s208_s8] sm:$0xff] %v328_v21  ;;  %350 = vst [vmem:[%s208_s8 + $0x20] sm:$0xff] %v338_v22  ;;  %v332_v29 = vadd.f32 %v331_v27, %v232_v18  ;;  %v342_v30 = vadd.f32 %v341_v28, %v242_v17  ;;  %v333_v31 = vpop.f32.mrb[3].mxu0  ;;  %v343_v32 = vpop.f32.mrb[3].mxu1 }
  0xf6   : > { %347 = vst [vmem:[%s208_s8 + $0x8] sm:$0xff] %v330_v25  ;;  %351 = vst [vmem:[%s208_s8 + $0x28] sm:$0xff] %v340_v26  ;;  %v334_v33 = vadd.f32 %v333_v31, %v232_v18  ;;  %v344_v34 = vadd.f32 %v343_v32, %v242_v17 }
  0xf7   : > { %348 = vst [vmem:[%s208_s8 + $0x10] sm:$0xff] %v332_v29  ;;  %352 = vst [vmem:[%s208_s8 + $0x30] sm:$0x7] %v342_v30 }
  0xf8   : > { %349 = vst [vmem:[%s208_s8 + $0x18] sm:$0xff] %v334_v33  ;;  %353 = vst [vmem:[%s208_s8 + $0x38] sm:$0x7] %v344_v34 }
  0xf9 PF: > { %s13_s14 = sadd.s32 1, %s529_s14   ;;  %s611_s12 = smov %s525_s13 }
  0xfa   : > { %p10_p5 = scmp.ge.s32.totalorder %s13_s14, 4   ;;  %s612_s13 = smov %s614_s15 }
  0xfc   :  { %12 = sbr.rel (!%p10_p5) target bundleno = 2 (0x2), region = 62 }

</bundles_post_ra>
